<compile_context>
chip_gen: v7x
topology: tpu7x:2x2x1
jax: 0.10.0
libtpu: 0.0.40
codegen_flags: <defaults>
</compile_context>

<pallas_src>
import jax
import jax.numpy as jnp
from jax.experimental import pallas as pl
from jax.experimental.pallas import tpu as pltpu


# --------------------------------------------------------------------------
# helpers
# --------------------------------------------------------------------------
def _round_up(x, m):
    return ((x + m - 1) // m) * m


def _vmem_limit_bytes():
    """Scoped-VMEM limit to request: ~3/4 of the physical per-core VMEM."""
    cap = 64 * 1024 * 1024          # conservative fallback (v7x per-TC)
    try:
        cap = int(pltpu.get_tpu_info().vmem_capacity_bytes)
    except Exception:
        pass
    return (cap * 3) // 4


def _pick_tile_bt(bt, in_dim, out_dim, resident_bytes, itemsize, vmem_limit):
    """Largest row-tile whose double-buffered in/out streams (+ resident
    weights) fit comfortably inside the scoped VMEM limit."""
    budget = max(vmem_limit // 2 - resident_bytes, 1 << 20)
    per_row = 2 * (in_dim + out_dim) * itemsize        # 2 pipeline buffers
    tile = budget // max(per_row, 1)
    tile = max(8, min(int(tile), 2048))
    tile = (tile // 8) * 8
    return int(min(tile, _round_up(bt, 8)))


# --------------------------------------------------------------------------
# kernels
# --------------------------------------------------------------------------
def _dense_kernel(x_ref, w_ref, o_ref):
    o_ref[...] = jnp.dot(x_ref[...], w_ref[...],
                         preferred_element_type=jnp.float32).astype(o_ref.dtype)


def _dense_kernel_bias(x_ref, w_ref, b_ref, o_ref):
    acc = jnp.dot(x_ref[...], w_ref[...], preferred_element_type=jnp.float32)
    o_ref[...] = (acc + b_ref[...].astype(jnp.float32)).astype(o_ref.dtype)


def _grouped_kernel(x_ref, w_ref, o_ref):
    o_ref[...] = jnp.dot(x_ref[...], w_ref[0],
                         preferred_element_type=jnp.float32).astype(o_ref.dtype)


def _grouped_kernel_bias(x_ref, w_ref, b_ref, o_ref):
    acc = jnp.dot(x_ref[...], w_ref[0], preferred_element_type=jnp.float32)
    o_ref[...] = (acc + b_ref[0].astype(jnp.float32)).astype(o_ref.dtype)


def _bmm_kernel(x_ref, w_ref, o_ref):
    o_ref[0] = jnp.dot(x_ref[0], w_ref[0],
                       preferred_element_type=jnp.float32).astype(o_ref.dtype)


def _bmm_kernel_bias(x_ref, w_ref, b_ref, o_ref):
    acc = jnp.dot(x_ref[0], w_ref[0], preferred_element_type=jnp.float32)
    o_ref[0] = (acc + b_ref[0].astype(jnp.float32)).astype(o_ref.dtype)


# --------------------------------------------------------------------------
# pallas_call wrappers
# --------------------------------------------------------------------------
def _dense_matmul(x2d, w_full, b_full, tile_bt, vmem_limit):
    """x2d: (Bt, N) ; w_full: (N, M) kept resident ; b_full: (1, M) or None."""
    bt, n = x2d.shape
    m = w_full.shape[1]
    nbt = bt // tile_bt
    in_specs = [
        pl.BlockSpec((tile_bt, n), lambda i: (i, 0)),
        pl.BlockSpec((n, m), lambda i: (0, 0)),        # constant -> stays resident
    ]
    args = [x2d, w_full]
    kernel = _dense_kernel
    if b_full is not None:
        in_specs.append(pl.BlockSpec((1, m), lambda i: (0, 0)))
        args.append(b_full)
        kernel = _dense_kernel_bias
    return pl.pallas_call(
        kernel,
        out_shape=jax.ShapeDtypeStruct((bt, m), x2d.dtype),
        grid_spec=pltpu.PrefetchScalarGridSpec(
            num_scalar_prefetch=0,
            grid=(nbt,),
            in_specs=in_specs,
            out_specs=pl.BlockSpec((tile_bt, m), lambda i: (i, 0)),
        ),
        compiler_params=pltpu.CompilerParams(
            dimension_semantics=("parallel",),
            vmem_limit_bytes=vmem_limit),
    )(*args)


def _grouped_matmul(x2d, weights, bias, tile_bt, vmem_limit):
    """x2d: (Bt, g*in_g) ; weights: (g, in_g, out_g) ; bias: (g,1,out_g)|None.

    Returns (Bt, g*out_g) in blocked (no-shuffle) column order.  Requires
    in_g % 128 == 0 and out_g % 128 == 0 (lane-dense blocks, unmasked stores).
    """
    bt = x2d.shape[0]
    g, in_g, out_g = weights.shape
    nbt = bt // tile_bt
    in_specs = [
        pl.BlockSpec((tile_bt, in_g), lambda gi, bi: (bi, gi)),
        # index_map independent of bi -> weight block not re-DMA'd across Bt.
        pl.BlockSpec((1, in_g, out_g), lambda gi, bi: (gi, 0, 0)),
    ]
    args = [x2d, weights]
    kernel = _grouped_kernel
    if bias is not None:
        in_specs.append(pl.BlockSpec((1, 1, out_g), lambda gi, bi: (gi, 0, 0)))
        args.append(bias)
        kernel = _grouped_kernel_bias
    return pl.pallas_call(
        kernel,
        out_shape=jax.ShapeDtypeStruct((bt, g * out_g), x2d.dtype),
        grid_spec=pltpu.PrefetchScalarGridSpec(
            num_scalar_prefetch=0,
            grid=(g, nbt),                     # Bt innermost
            in_specs=in_specs,
            out_specs=pl.BlockSpec((tile_bt, out_g), lambda gi, bi: (bi, gi)),
        ),
        compiler_params=pltpu.CompilerParams(
            dimension_semantics=("parallel", "parallel"),
            vmem_limit_bytes=vmem_limit),
    )(*args)


def _batched_group_matmul(x_g, weights, bias, tile_bt, vmem_limit):
    """Fallback for small groups whose dense block-diagonal weight would be
    too large to keep resident.  x_g: (g, Bt, in_g)."""
    g, bt, in_g = x_g.shape
    out_g = weights.shape[-1]
    nbt = bt // tile_bt
    in_specs = [
        pl.BlockSpec((1, tile_bt, in_g), lambda gi, bi: (gi, bi, 0)),
        pl.BlockSpec((1, in_g, out_g), lambda gi, bi: (gi, 0, 0)),
    ]
    args = [x_g, weights]
    kernel = _bmm_kernel
    if bias is not None:
        in_specs.append(pl.BlockSpec((1, 1, out_g), lambda gi, bi: (gi, 0, 0)))
        args.append(bias)
        kernel = _bmm_kernel_bias
    return pl.pallas_call(
        kernel,
        out_shape=jax.ShapeDtypeStruct((g, bt, out_g), x_g.dtype),
        grid_spec=pltpu.PrefetchScalarGridSpec(
            num_scalar_prefetch=0,
            grid=(g, nbt),
            in_specs=in_specs,
            out_specs=pl.BlockSpec((1, tile_bt, out_g), lambda gi, bi: (gi, bi, 0)),
        ),
        compiler_params=pltpu.CompilerParams(
            dimension_semantics=("parallel", "parallel"),
            vmem_limit_bytes=vmem_limit),
    )(*args)


# --------------------------------------------------------------------------
# module
# --------------------------------------------------------------------------
class GroupLinearPallas:
    """JAX/Pallas port of the PyTorch GroupLinear forward pass."""

    # Dense block-diagonal fused path used when the packed weight (kept fully
    # resident in VMEM) is at most this many bytes.
    _DENSE_WEIGHT_LIMIT = 8 * 1024 * 1024

    def __init__(self, in_features, out_features, n_groups=4,
                 use_bias=False, use_shuffle=False, key=None,
                 dtype=jnp.float32):
        assert in_features % n_groups == 0
        assert out_features % n_groups == 0
        self.in_features = int(in_features)
        self.out_features = int(out_features)
        self.n_groups = int(n_groups)
        self.use_bias = bool(use_bias)
        self.feature_shuffle = bool(use_shuffle)
        self.dtype = dtype
        self.in_g = self.in_features // self.n_groups
        self.out_g = self.out_features // self.n_groups

        itemsize = jnp.dtype(dtype).itemsize
        dense_bytes = self.in_features * self.out_features * itemsize
        if self.n_groups > 1 and self.in_g % 128 == 0 and self.out_g % 128 == 0:
            self._path = "grouped"
        elif dense_bytes <= self._DENSE_WEIGHT_LIMIT:
            self._path = "dense"
        else:
            self._path = "bmm"   # many small groups with very wide features

        if key is None:
            key = jax.random.PRNGKey(0)
        # xavier_uniform_ on a (g, in_g, out_g) tensor (PyTorch fan rules:
        # fan_in = in_g * out_g, fan_out = g * out_g).
        fan_in = self.in_g * self.out_g
        fan_out = self.n_groups * self.out_g
        bound = float(jnp.sqrt(6.0 / (fan_in + fan_out)))
        weights = jax.random.uniform(
            key, (self.n_groups, self.in_g, self.out_g), dtype=dtype,
            minval=-bound, maxval=bound)
        bias = (jnp.zeros((self.n_groups, 1, self.out_g), dtype=dtype)
                if self.use_bias else None)
        self.load_params(weights, bias)

    def load_params(self, weights, bias=None):
        g, in_g, out_g = self.n_groups, self.in_g, self.out_g
        weights = jnp.asarray(weights, dtype=self.dtype)
        assert weights.shape == (g, in_g, out_g)
        self.weights = weights
        if self.use_bias:
            if bias is None:
                bias = jnp.zeros((g, 1, out_g), dtype=self.dtype)
            self.bias = jnp.asarray(bias, dtype=self.dtype).reshape(g, 1, out_g)
        else:
            self.bias = None

        if self._path == "dense":
            # Pack into a dense block-diagonal (N, M) weight; bake the feature
            # shuffle into the column order so the kernel's output is final.
            eye = jnp.eye(g, dtype=self.dtype)
            w_full = (weights[:, :, None, :] * eye[:, None, :, None]
                      ).reshape(self.in_features, self.out_features)
            if self.feature_shuffle:
                w_full = w_full.reshape(self.in_features, g, out_g)
                w_full = jnp.transpose(w_full, (0, 2, 1))
                w_full = w_full.reshape(self.in_features, self.out_features)
            self._w_full = w_full
            if self.use_bias:
                b_full = self.bias.reshape(g, out_g)
                if self.feature_shuffle:
                    b_full = b_full.T
                self._b_full = b_full.reshape(1, self.out_features)
            else:
                self._b_full = None
        else:
            self._w_full = None
            self._b_full = None

    # --- core 2-D path: x2d (Bt, N) -> flat (Bt, M) -------------------------
    def _forward_2d(self, x2d):
        bt = x2d.shape[0]
        itemsize = jnp.dtype(x2d.dtype).itemsize
        vmem_limit = _vmem_limit_bytes()
        g, in_g, out_g = self.n_groups, self.in_g, self.out_g

        if self._path == "dense":
            resident = 2 * (self._w_full.size
                            + (self.out_features if self.use_bias else 0)) * itemsize
            tile_bt = _pick_tile_bt(bt, self.in_features, self.out_features,
                                    resident, itemsize, vmem_limit)
        else:
            resident = 2 * (in_g * out_g
                            + (out_g if self.use_bias else 0)) * itemsize
            tile_bt = _pick_tile_bt(bt, in_g, out_g, resident, itemsize,
                                    vmem_limit)

        bt_pad = _round_up(bt, tile_bt)
        xp = x2d if bt_pad == bt else jnp.pad(x2d, ((0, bt_pad - bt), (0, 0)))

        if self._path == "dense":
            out = _dense_matmul(xp, self._w_full, self._b_full, tile_bt,
                                vmem_limit)
        elif self._path == "grouped":
            out = _grouped_matmul(xp, self.weights, self.bias, tile_bt,
                                  vmem_limit)
            if self.feature_shuffle:
                # TODO(synk): express this strided column interleave through
                # the output BlockSpec instead of a post-kernel permute.
                out = out.reshape(bt_pad, g, out_g)
                out = jnp.transpose(out, (0, 2, 1)).reshape(bt_pad,
                                                            self.out_features)
        else:  # "bmm" fallback
            # TODO(synk): avoid the pre/post transposes for this rare config
            # (many small groups with a very wide total feature dim).
            x_g = jnp.transpose(xp.reshape(bt_pad, g, in_g), (1, 0, 2))
            res = _batched_group_matmul(x_g, self.weights, self.bias,
                                        tile_bt, vmem_limit)
            if self.feature_shuffle:
                out = jnp.transpose(res, (1, 2, 0)).reshape(bt_pad,
                                                            self.out_features)
            else:
                out = jnp.transpose(res, (1, 0, 2)).reshape(bt_pad,
                                                            self.out_features)

        if bt_pad != bt:
            out = out[:bt]
        return out

    def __call__(self, x):
        if x.ndim == 2:
            out = self._forward_2d(x)
            # torch returns (bsz, n_groups, out_g) for 2-D inputs
            return out.reshape(x.shape[0], self.n_groups, self.out_g)
        elif x.ndim == 3:
            T, B, N = x.shape
            out = self._forward_2d(x.reshape(T * B, N))
            return out.reshape(T, B, self.out_features)
        else:
            raise NotImplementedError


# --------------------------------------------------------------------------
# pure-JAX reference (mirrors the PyTorch forward)
# --------------------------------------------------------------------------
def _reference(x, weights, bias, n_groups, use_bias, use_shuffle):
    def bmm2d(x2d):
        bsz = x2d.shape[0]
        xg = x2d.reshape(bsz, n_groups, -1).transpose(1, 0, 2)
        out = jnp.einsum('gbi,gio->gbo', xg, weights,
                         precision=jax.lax.Precision.HIGHEST)
        if use_bias:
            out = out + bias
        if use_shuffle:
            out = jnp.transpose(out, (1, 2, 0)).reshape(bsz, n_groups, -1)
        else:
            out = jnp.transpose(out, (1, 0, 2))
        return out
    if x.ndim == 2:
        return bmm2d(x)
    T, B, N = x.shape
    out = bmm2d(x.reshape(T * B, N))
    return out.reshape(T, B, -1)


if __name__ == "__main__":
    keys = jax.random.split(jax.random.PRNGKey(0), 8)

    # 1) small dense-path config (3-D seq input, no bias, no shuffle)
    T, B = 8, 2
    mod = GroupLinearPallas(32, 32, n_groups=4, use_bias=False,
                            use_shuffle=False, key=keys[0])
    x = jax.random.normal(keys[1], (T, B, 32), dtype=jnp.float32)
    out = jax.block_until_ready(mod(x))
    ref = _reference(x, mod.weights, None, 4, False, False)
    assert out.shape == (T, B, 32), out.shape
    assert jnp.allclose(out, ref, atol=1e-4, rtol=1e-4), "dense path mismatch"

    # 2) dense path with bias + feature shuffle, 2-D input, ragged batch (pads)
    mod2 = GroupLinearPallas(32, 48, n_groups=4, use_bias=True,
                             use_shuffle=True, key=keys[2])
    bias2 = 0.5 * jax.random.normal(keys[3], (4, 1, 12), dtype=jnp.float32)
    mod2.load_params(mod2.weights, bias2)
    x2 = jax.random.normal(keys[4], (10, 32), dtype=jnp.float32)
    out2 = jax.block_until_ready(mod2(x2))
    ref2 = _reference(x2, mod2.weights, mod2.bias, 4, True, True)
    assert out2.shape == (10, 4, 12), out2.shape
    assert jnp.allclose(out2, ref2, atol=1e-4, rtol=1e-4), "shuffle/bias mismatch"

    # 3) grouped path (lane-dense groups: in_g = out_g = 128), bias, 3-D input
    mod3 = GroupLinearPallas(512, 512, n_groups=4, use_bias=True,
                             use_shuffle=False, key=keys[5])
    bias3 = 0.1 * jax.random.normal(keys[6], (4, 1, 128), dtype=jnp.float32)
    mod3.load_params(mod3.weights, bias3)
    x3 = jax.random.normal(keys[7], (4, 4, 512), dtype=jnp.float32)
    out3 = jax.block_until_ready(mod3(x3))
    ref3 = _reference(x3, mod3.weights, mod3.bias, 4, True, False)
    assert out3.shape == (4, 4, 512), out3.shape
    assert jnp.allclose(out3, ref3, atol=2e-3, rtol=2e-3), "grouped path mismatch"

    print("KERNEL_OK")
</pallas_src>

<mosaic_0001>
module attributes {stable_mosaic.version = 11 : i64} {
  func.func @_dense_kernel(%arg0: i32, %arg1: memref<16x32xf32, #tpu.memory_space<vmem>>, %arg2: memref<32x32xf32, #tpu.memory_space<vmem>>, %arg3: memref<16x32xf32, #tpu.memory_space<vmem>>) attributes {dimension_semantics = [#tpu.dimension_semantics<parallel>], iteration_bounds = array<i64: 1>, scalar_prefetch = 0 : i64, scratch_operands = 0 : i64, tpu.core_type = #tpu.core_type<tc>, window_params = [{transform_indices = @transform_0, window_bounds = array<i64: 16, 32>}, {pipeline_mode = #tpu.pipeline_mode<synchronous>, transform_indices = @transform_1, window_bounds = array<i64: 32, 32>}, {transform_indices = @transform_2, window_bounds = array<i64: 16, 32>}]} {
    %c0 = arith.constant 0 : index
    %c0_0 = arith.constant 0 : index
    %0 = vector.load %arg1[%c0, %c0_0] : memref<16x32xf32, #tpu.memory_space<vmem>>, vector<16x32xf32>
    %c0_1 = arith.constant 0 : index
    %c0_2 = arith.constant 0 : index
    %1 = vector.load %arg2[%c0_1, %c0_2] : memref<32x32xf32, #tpu.memory_space<vmem>>, vector<32x32xf32>
    %cst = arith.constant dense<0.000000e+00> : vector<16x32xf32>
    %2 = tpu.matmul %0, %1, %cst {dimension_numbers = #tpu.dot_dimension_numbers<[1], [0], [0], [1], [0, 0, 1, 1], [], []>} : vector<16x32xf32>, vector<32x32xf32>, vector<16x32xf32> -> vector<16x32xf32>
    %c0_3 = arith.constant 0 : index
    %c0_4 = arith.constant 0 : index
    %3 = vector.load %arg3[%c0_3, %c0_4] : memref<16x32xf32, #tpu.memory_space<vmem>>, vector<16x32xf32>
    tpu.vector_store %arg3[%c0_3, %c0_4], %2 {strides = array<i32>} : memref<16x32xf32, #tpu.memory_space<vmem>>, vector<16x32xf32>,
    return
  }
  func.func @transform_0(%arg0: i32) -> (i32, i32) {
    %c0_i32 = arith.constant 0 : i32
    %c0_i32_0 = arith.constant 0 : i32
    return %arg0, %c0_i32 : i32, i32
  }
  func.func @transform_1(%arg0: i32) -> (i32, i32) {
    %c0_i32 = arith.constant 0 : i32
    %c0_i32_0 = arith.constant 0 : i32
    %c0_i32_1 = arith.constant 0 : i32
    return %c0_i32, %c0_i32_0 : i32, i32
  }
  func.func @transform_2(%arg0: i32) -> (i32, i32) {
    %c0_i32 = arith.constant 0 : i32
    %c0_i32_0 = arith.constant 0 : i32
    return %arg0, %c0_i32 : i32, i32
  }
}

</mosaic_0001>

<bundles_post_ra>
// kernel: tpu_custom_call.1
= control target key start
LH: loop header
LB: loop body
LE: loop exit
PB: predicated region body
PF: predicated region fallthrough
CT: control target
= control target key end

     0   :  { %7 = vsyncpa [#allocation3], 0  ;;  %s321_s0 = inlined_call_operand.hbm [shape: f32[16,32], index: 0, kind: input, shape index: {}]   ;;  %s322_s1 = inlined_call_operand.hbm [shape: f32[32,32], index: 1, kind: input, shape index: {}]   ;;  %s323_s2 = inlined_call_operand.hbm [shape: f32[16,32], index: 2, kind: output, shape index: {}]  }
   0x1   :  { %8 = vsyncpa [#allocation6], 0 }
   0x2   :  { %9 = vsyncpa [#allocation4], 0  ;;  %s252_s9 = smov [#allocation2]   ;;  %s180_s13 = scalar_lea.hbm %s321_s0, 256 }
   0x3   :  { %s15_s10 = sshll.u32 %s252_s9, 4  ;;  %p181_p0 = scmp.ne.s32.totalorder %s321_s0, %s180_s13  ;;  %s16_s10 = int_to_ptr.vmem [resolvable:$true] %s15_s10 }
   0x4   :  { %p184_p1 = scmp.lt.u32.totalorder %s180_s13, %s321_s0 }
   0x6   :  { %p186_p2 = pnand %p184_p1, %p181_p0 }
   0x8   :  { %189 = shalt.err (!%p186_p2)
}
   0x9   :  { %s190_s18 = scalar_lea.vmem %s16_s10, 256  ;;  %p195_p4 = scmp.lt.s32.totalorder %s16_s10, %s16_s10 }
   0xa   :  { %p191_p3 = scmp.ne.s32.totalorder %s16_s10, %s190_s18  ;;  %p196_p5 = scmp.lt.s32.totalorder %s190_s18, %s190_s18 }
   0xc   :  { %p197_p6 = por %p196_p5, %p195_p4 }
   0xe   :  { %p198_p7 = pnand %p197_p6, %p191_p3 }
  0x10   :  { %201 = shalt.err (!%p198_p7)
}
  0x11   :  { %s253_s19 = smov 128   ;;  %s254_s20 = smov 8  }
  0x12   :  { %21 = dma.hbm_to_vmem [thread:$0]  %s321_s0, 256, %s16_s10, [#allocation3], %s253_s19, %s253_s19, %s254_s20  }
  0x13   :  { %s255_s23 = smov [#allocation5]   ;;  %s202_s27 = scalar_lea.hbm %s322_s1, 512 }
  0x14   :  { %s27_s24 = sshll.u32 %s255_s23, 4  ;;  %p203_p8 = scmp.ne.s32.totalorder %s322_s1, %s202_s27  ;;  %s28_s24 = int_to_ptr.vmem [resolvable:$true] %s27_s24 }
  0x15   :  { %p206_p9 = scmp.lt.u32.totalorder %s202_s27, %s322_s1 }
  0x17   :  { %p208_p10 = pnand %p206_p9, %p203_p8 }
  0x19   :  { %211 = shalt.err (!%p208_p10)
}
  0x1a   :  { %s212_s4 = scalar_lea.vmem %s28_s24, 512  ;;  %p217_p12 = scmp.lt.s32.totalorder %s28_s24, %s28_s24 }
  0x1b   :  { %p213_p11 = scmp.ne.s32.totalorder %s28_s24, %s212_s4  ;;  %p218_p13 = scmp.lt.s32.totalorder %s212_s4, %s212_s4 }
  0x1d   :  { %p219_p0 = por %p218_p13, %p217_p12 }
  0x1f   :  { %p220_p1 = pnand %p219_p0, %p213_p11 }
  0x21   :  { %223 = shalt.err (!%p220_p1)
}
  0x22   :  { %33 = dma.hbm_to_vmem [thread:$0]  %s322_s1, 512, %s28_s24, [#allocation6], %s253_s19, %s253_s19, %s254_s20  }
  0x23   :  { %246 = dma.done.wait [#allocation3], 256  }
  0x24   :  { %247 = vsyncadd [#allocation3], 4294967040 }
  0x25   :  { %248 = dma.done.wait [#allocation6], 512  }
  0x26   :  { %249 = vsyncadd [#allocation6], 4294966784  ;;  %vm46_vm0 = vcmask 261120   ;;  %v42_v0 = vld [vmem:[#allocation5] sm:$0xff]  ;;  %v43_v1 = vld [vmem:[#allocation5 + $0x8] sm:$0xff]  ;;  %s256_s1 = smov [#allocation7]  }
  0x27   :  { %v44_v2 = vld [vmem:[#allocation5 + $0x10] sm:$0xff]  ;;  %v167_v3 = vpack.c.bf16 %v43_v1, %v42_v0  ;;  %v45_v4 = vld [vmem:[#allocation5 + $0x18] sm:$0xff]  ;;  %s135_s6 = sshll.u32 %s256_s1, 4  ;;  %s136_s6 = int_to_ptr.vmem [resolvable:$true] %s135_s6 }
  0x28   :  { %v40_v5 = vld [vmem:[#allocation2] sm:$0xff]  ;;  %v171_v6 = vpack.c.bf16 %v45_v4, %v44_v2  ;;  %v41_v7 = vld [vmem:[#allocation2 + $0x8] sm:$0xff]  ;;  %s224_s7 = scalar_lea.vmem %s136_s6, 256  ;;  %p229_p3 = scmp.lt.s32.totalorder %s136_s6, %s136_s6 }
  0x29   :  { %164 = vmatprep.mubr.msk.f32.mxu0 %vm46_vm0, %v40_v5  ;;  %168 = vmatprep.subr.bf16.mxu0 %v167_v3  ;;  %p225_p2 = scmp.ne.s32.totalorder %s136_s6, %s224_s7  ;;  %p230_p4 = scmp.lt.s32.totalorder %s224_s7, %s224_s7 }
  0x2a   :  { %170 = vmatpush3.bf16.msra.mxu0 %v167_v3 }
  0x2b   :  { %172 = vmatprep.subr.bf16.mxu0 %v171_v6  ;;  %p231_p5 = por %p230_p4, %p229_p3 }
  0x2d   :  { %p232_p6 = pnand %p231_p5, %p225_p2 }
  0x2e   :  { %174 = vmatpush3.bf16.msra.mxu0 %v171_v6 }
  0x31   :  { %165 = vmatmul.mubr.msk.f32.vlgmr.msra.gmra.mrb[0].mxu0 %vm46_vm0, %v41_v7 }
 0x104   :  { %v166_v8 = vpop.f32.mrb[0].mxu0 }
 0x105   :  { %129 = vst.msk [vmem:[#allocation7 + $0x8] sm:$0xff] %vm46_vm0, %v166_v8  ;;  %v119_v9 = vpop.f32.mrb[1].mxu0 }
 0x106   :  { %128 = vst.msk [vmem:[#allocation7] sm:$0xff] %vm46_vm0, %v119_v9 }
 0x107   :  { %235 = shalt.err (!%p232_p6)
}
 0x108   :  { %s236_s10 = scalar_lea.hbm %s323_s2, 256 }
 0x109   :  { %p237_p7 = scmp.ne.s32.totalorder %s323_s2, %s236_s10  ;;  %p240_p8 = scmp.lt.u32.totalorder %s236_s10, %s323_s2 }
 0x10b   :  { %p242_p9 = pnand %p240_p8, %p237_p7 }
 0x10d   :  { %245 = shalt.err (!%p242_p9)
}
 0x10e   :  { %141 = dma.vmem_to_hbm [thread:$0]  %s136_s6, 256, %s323_s2, [#allocation4], %s253_s19, %s253_s19, %s254_s20  }
 0x10f   :  { %250 = dma.done.wait [#allocation4], 256  }
 0x110   :  { %251 = vsyncadd [#allocation4], 4294967040 }
 0x111   :  { %145 = vsyncpa [#allocation3], 1 }
 0x112   :  { %146 = vsyncpa [#allocation6], 1 }
 0x113   :  { %147 = vsyncpa [#allocation4], 1 }

</bundles_post_ra>
